<compile_context>
chip_gen: v6e
topology: v6e:2x2x1
jax: 0.10.0
libtpu: 0.0.40
codegen_flags: <defaults>
</compile_context>

<pallas_src>
import functools

import numpy as np
import jax
import jax.numpy as jnp
from jax.experimental import pallas as pl
from jax.experimental.pallas import tpu as pltpu


def _conv_bn_act_kernel(x_ref, w_ref, b_ref, rc_ref, o_ref, p_ref, *,
                        K, H, W, pad, dilation):
    """Fused conv('same', stride=1) + BN(inference) + ReLU6, lane-dense layout.

    x_ref : (Nb, Cinp, HW)       input block, channels zero-padded to Cinp
    w_ref : (Cout, K*K*Cinp)     BN-scale-folded weights (tap-major columns)
    b_ref : (Cout, 1)            folded BN bias (f32)
    rc_ref: (2, HW)              int32 row / col index of every pixel
    o_ref : (Nb, Cout, HW)       output block, already NCHW (flat spatial)
    p_ref : (K*K*Cinp, Nb*HW)    VMEM scratch: batched im2col matrix
    """
    nb, cinp, hw = x_ref.shape
    dtype = x_ref.dtype

    row = rc_ref[0:1, :]                      # (1, HW) int32
    col = rc_ref[1:2, :]                      # (1, HW) int32

    # ---- batched im2col: every tap of every image, full-tile stores -------
    for kh in range(K):
        for kw in range(K):
            dh = kh * dilation - pad
            dw = kw * dilation - pad
            t = kh * K + kw
            d = dh * W + dw
            shift = (-d) % hw                 # jnp.roll-style shift

            # Border-validity mask (same for all images); only the
            # conditions that can actually fail are emitted (VPU compares).
            conds = []
            if dh > 0:
                conds.append(row < (H - dh))
            elif dh < 0:
                conds.append(row >= -dh)
            if dw > 0:
                conds.append(col < (W - dw))
            elif dw < 0:
                conds.append(col >= -dw)
            mask = None
            if conds:
                m = conds[0]
                for c in conds[1:]:
                    m = jnp.logical_and(m, c)
                mask = m.astype(dtype)        # (1, HW) — broadcast over rows

            for n in range(nb):               # static unroll, Nb is small
                xs = x_ref[n]                 # (Cinp, HW), lane-dense
                rolled = pltpu.roll(xs, shift, 1) if shift else xs   # XLU
                tap = rolled * mask if mask is not None else rolled
                # 8-aligned rows, 128-aligned lanes -> full unmasked stores
                p_ref[t * cinp:(t + 1) * cinp, n * hw:(n + 1) * hw] = tap

    # ---- ONE MXU contraction over all taps / channels / images ------------
    acc = jnp.dot(w_ref[...], p_ref[...],
                  preferred_element_type=jnp.float32)    # (Cout, Nb*HW) f32
    y = jnp.clip(acc + b_ref[...], 0.0, 6.0)             # BN bias + ReLU6

    for n in range(nb):                       # lane-dense (Cout, HW) stores
        o_ref[n] = y[:, n * hw:(n + 1) * hw].astype(o_ref.dtype)


def _tpu_vmem_budget_and_cores():
    """Conservative per-block VMEM budget + TensorCore count (best effort)."""
    budget = 24 << 20                 # fits the 32 MiB scoped default budget
    cores = 1                         # v5e/v6e: 1 TC; v7x reports 2 if known
    try:
        info = pltpu.get_tpu_info()
        phys = int(getattr(info, "vmem_capacity_bytes", 0) or 0)
        if phys:
            budget = min(budget, max(phys // 3, 4 << 20))
        cores = int(getattr(info, "num_cores", 1) or 1)
    except Exception:
        pass
    return budget, cores


def _block_vmem_bytes(nb, *, cinp, cout, hw, K, in_item, out_item):
    """VMEM footprint of one grid step: in/out double-buffers + im2col."""
    sub_out = max(8, 32 // out_item)
    coutp = -(-cout // sub_out) * sub_out
    x_blk = 2 * nb * cinp * hw * in_item            # double-buffered input
    o_blk = 2 * nb * coutp * hw * out_item          # double-buffered output
    scratch = K * K * cinp * nb * hw * in_item      # single im2col buffer
    w_blk = 2 * coutp * K * K * cinp * in_item      # (tiny) weight buffer
    misc = 256 << 10                                # bias / rc / slack
    return x_blk + o_blk + scratch + w_blk + misc


def _pick_images_per_block(n, bytes_fn, budget, cores):
    """Largest divisor of n fitting the budget; keep >=1 grid step per TC."""
    divisors = [d for d in range(1, n + 1) if n % d == 0]
    fitting = [d for d in divisors if bytes_fn(d) <= budget]
    if not fitting:
        # TODO(synk): add a spatial (HW) grid axis so a single image can be
        # tiled when it alone exceeds the VMEM budget (needed for large
        # feature maps on v7x's 64 MiB VMEM).
        raise ValueError(
            "a single image exceeds the VMEM block budget "
            f"({bytes_fn(1)} > {budget} bytes); spatial tiling required")
    nb = max(fitting)
    if cores > 1:
        while nb > 1 and n // nb < min(cores, n):
            nb = max(d for d in fitting if d < nb)
    return nb


def dynamic_conv_bn_act(x_nchw, weight_oihw, gamma, beta, running_mean,
                        running_var, *, active_out_channel, kernel_size=3,
                        stride=1, dilation=1, eps=1e-5, compute_dtype=None,
                        images_per_block=None):
    assert stride == 1, "kernel implements stride=1"
    assert kernel_size % 2 == 1, "'same' padding here assumes an odd kernel"
    N, Cin, H, W = x_nchw.shape
    K = kernel_size
    Cout = active_out_channel
    HW = H * W
    pad = ((K - 1) // 2) * dilation
    if compute_dtype is None:
        # Pass jnp.bfloat16 explicitly on v6e/v7x to halve HBM traffic and
        # the im2col scratch; default keeps input dtype (exact f32 path).
        compute_dtype = x_nchw.dtype
    compute_dtype = jnp.dtype(compute_dtype)
    in_item = compute_dtype.itemsize
    out_item = jnp.dtype(x_nchw.dtype).itemsize
    sub = max(8, 32 // in_item)            # sublane tile: 8 (f32) / 16 (bf16)
    Cinp = -(-Cin // sub) * sub            # channels padded to full tiles

    # --- glue: dynamic channel slicing + inference-BN folding --------------
    w = weight_oihw[:Cout, :Cin].astype(jnp.float32)      # (Cout, Cin, K, K)
    scale = gamma[:Cout] / jnp.sqrt(running_var[:Cout] + eps)
    bias = beta[:Cout] - running_mean[:Cout] * scale
    w_fold = w * scale[:, None, None, None]                # fold BN scale
    if Cinp != Cin:
        w_fold = jnp.pad(w_fold, ((0, 0), (0, Cinp - Cin), (0, 0), (0, 0)))
    # tap-major weight matrix: column (kh*K+kw)*Cinp + c <-> w[:, c, kh, kw]
    w_mat = jnp.transpose(w_fold, (0, 2, 3, 1)).reshape(Cout, K * K * Cinp)
    w_mat = w_mat.astype(compute_dtype)
    bias_col = bias.reshape(Cout, 1).astype(jnp.float32)

    # --- tiny (2, HW) row/col index operand (border masks rebuilt in-kernel)
    rows = np.repeat(np.arange(H, dtype=np.int32), W)
    cols = np.tile(np.arange(W, dtype=np.int32), H)
    rc = jnp.asarray(np.stack([rows, cols], axis=0))        # (2, HW) int32

    # --- layout: NCHW kept; spatial flattened; channels tile-padded --------
    x_flat = x_nchw.reshape(N, Cin, HW).astype(compute_dtype)
    if Cinp != Cin:
        x_flat = jnp.pad(x_flat, ((0, 0), (0, Cinp - Cin), (0, 0)))

    budget, cores = _tpu_vmem_budget_and_cores()
    bytes_fn = functools.partial(_block_vmem_bytes, cinp=Cinp, cout=Cout,
                                 hw=HW, K=K, in_item=in_item,
                                 out_item=out_item)
    Nb = images_per_block or _pick_images_per_block(N, bytes_fn, budget, cores)
    assert N % Nb == 0

    kernel = functools.partial(_conv_bn_act_kernel, K=K, H=H, W=W, pad=pad,
                               dilation=dilation)

    out_flat = pl.pallas_call(
        kernel,
        out_shape=jax.ShapeDtypeStruct((N, Cout, HW), x_nchw.dtype),
        grid=(N // Nb,),
        in_specs=[
            pl.BlockSpec((Nb, Cinp, HW), lambda n: (n, 0, 0)),
            pl.BlockSpec((Cout, K * K * Cinp), lambda n: (0, 0)),
            pl.BlockSpec((Cout, 1), lambda n: (0, 0)),
            pl.BlockSpec((2, HW), lambda n: (0, 0)),
        ],
        out_specs=pl.BlockSpec((Nb, Cout, HW), lambda n: (n, 0, 0)),
        scratch_shapes=[pltpu.VMEM((K * K * Cinp, Nb * HW), compute_dtype)],
        compiler_params=pltpu.CompilerParams(
            dimension_semantics=("parallel",),
            vmem_limit_bytes=32 * 1024 * 1024),
    )(x_flat, w_mat, bias_col, rc)

    return out_flat.reshape(N, Cout, H, W)       # already NCHW; free reshape


def _reference(x_nchw, weight_oihw, gamma, beta, rm, rv, *, active_out_channel,
               kernel_size=3, eps=1e-5):
    """Plain-JAX reference (lax conv + BN + relu6) for correctness check."""
    Cout = active_out_channel
    Cin = x_nchw.shape[1]
    w = weight_oihw[:Cout, :Cin]
    y = jax.lax.conv_general_dilated(
        x_nchw.astype(jnp.float32), w.astype(jnp.float32),
        window_strides=(1, 1), padding="SAME",
        dimension_numbers=("NCHW", "OIHW", "NCHW"))
    scale = gamma[:Cout] / jnp.sqrt(rv[:Cout] + eps)
    bias = beta[:Cout] - rm[:Cout] * scale
    y = y * scale[None, :, None, None] + bias[None, :, None, None]
    return jnp.clip(y, 0.0, 6.0)


if __name__ == "__main__":
    # Module config: in_channel_list=[4], out_channel_list=[8], kernel=3,
    # stride=1, dilation=1, use_bn=True, act_func='relu6'.
    in_channels = 4
    out_channels = 8
    kernel_size = 3
    N, H, W = 2, 16, 16

    key = jax.random.PRNGKey(0)
    k_x, k_w, k_g, k_b, k_m, k_v = jax.random.split(key, 6)

    x = jax.random.normal(k_x, (N, in_channels, H, W), jnp.float32)
    weight = 0.1 * jax.random.normal(
        k_w, (out_channels, in_channels, kernel_size, kernel_size), jnp.float32)
    gamma = jax.random.uniform(k_g, (out_channels,), jnp.float32, 0.5, 1.5)
    beta = 0.1 * jax.random.normal(k_b, (out_channels,), jnp.float32)
    running_mean = 0.1 * jax.random.normal(k_m, (out_channels,), jnp.float32)
    running_var = jax.random.uniform(k_v, (out_channels,), jnp.float32, 0.5, 1.5)

    out = dynamic_conv_bn_act(
        x, weight, gamma, beta, running_mean, running_var,
        active_out_channel=out_channels, kernel_size=kernel_size)
    out = jax.block_until_ready(out)

    ref = _reference(x, weight, gamma, beta, running_mean, running_var,
                     active_out_channel=out_channels, kernel_size=kernel_size)
    assert out.shape == (N, out_channels, H, W)
    assert jnp.allclose(out, ref, atol=1e-4, rtol=1e-4), "mismatch vs reference"

    print("KERNEL_OK")
</pallas_src>

<mosaic_0001>
module attributes {stable_mosaic.version = 11 : i64} {
  func.func @_conv_bn_act_kernel(%arg0: i32, %arg1: memref<2x8x256xf32, #tpu.memory_space<vmem>>, %arg2: memref<8x72xf32, #tpu.memory_space<vmem>>, %arg3: memref<8x1xf32, #tpu.memory_space<vmem>>, %arg4: memref<2x256xi32, #tpu.memory_space<vmem>>, %arg5: memref<2x8x256xf32, #tpu.memory_space<vmem>>, %arg6: memref<72x512xf32, #tpu.memory_space<vmem>>) attributes {dimension_semantics = [#tpu.dimension_semantics<parallel>], iteration_bounds = array<i64: 1>, scalar_prefetch = 0 : i64, scratch_operands = 1 : i64, tpu.core_type = #tpu.core_type<tc>, window_params = [{transform_indices = @transform_0, window_bounds = array<i64: 2, 8, 256>}, {pipeline_mode = #tpu.pipeline_mode<synchronous>, transform_indices = @transform_1, window_bounds = array<i64: 8, 72>}, {pipeline_mode = #tpu.pipeline_mode<synchronous>, transform_indices = @transform_2, window_bounds = array<i64: 8, 1>}, {pipeline_mode = #tpu.pipeline_mode<synchronous>, transform_indices = @transform_3, window_bounds = array<i64: 2, 256>}, {transform_indices = @transform_4, window_bounds = array<i64: 2, 8, 256>}]} {
    %c0 = arith.constant 0 : index
    %c0_0 = arith.constant 0 : index
    %0 = vector.load %arg4[%c0, %c0_0] : memref<2x256xi32, #tpu.memory_space<vmem>>, vector<1x256xi32>
    %c1 = arith.constant 1 : index
    %c0_1 = arith.constant 0 : index
    %1 = vector.load %arg4[%c1, %c0_1] : memref<2x256xi32, #tpu.memory_space<vmem>>, vector<1x256xi32>
    %c1_i32 = arith.constant 1 : i32
    %2 = vector.broadcast %c1_i32 : i32 to vector<1x256xi32>
    %3 = arith.cmpi sge, %0, %2 : vector<1x256xi32>
    %c1_i32_2 = arith.constant 1 : i32
    %4 = vector.broadcast %c1_i32_2 : i32 to vector<1x256xi32>
    %5 = arith.cmpi sge, %1, %4 : vector<1x256xi32>
    %6 = arith.andi %3, %5 : vector<1x256xi1>
    %7 = arith.extui %6 : vector<1x256xi1> to vector<1x256xi32>
    %8 = arith.sitofp %7 : vector<1x256xi32> to vector<1x256xf32>
    %c0_3 = arith.constant 0 : index
    %c0_4 = arith.constant 0 : index
    %c0_5 = arith.constant 0 : index
    %9 = vector.load %arg1[%c0_3, %c0_4, %c0_5] : memref<2x8x256xf32, #tpu.memory_space<vmem>>, vector<1x8x256xf32>
    %10 = vector.shape_cast %9 : vector<1x8x256xf32> to vector<8x256xf32>
    %c17_i32 = arith.constant 17 : i32
    %11 = tpu.dynamic_rotate %10 by %c17_i32 dim 1 : vector<8x256xf32>, i32 -> vector<8x256xf32>
    %12 = vector.broadcast %8 : vector<1x256xf32> to vector<8x256xf32>
    %13 = arith.mulf %11, %12 : vector<8x256xf32>
    %c0_6 = arith.constant 0 : index
    %c0_7 = arith.constant 0 : index
    %14 = vector.load %arg6[%c0_6, %c0_7] : memref<72x512xf32, #tpu.memory_space<vmem>>, vector<8x256xf32>
    tpu.vector_store %arg6[%c0_6, %c0_7], %13 {strides = array<i32>} : memref<72x512xf32, #tpu.memory_space<vmem>>, vector<8x256xf32>,
    %c1_8 = arith.constant 1 : index
    %c0_9 = arith.constant 0 : index
    %c0_10 = arith.constant 0 : index
    %15 = vector.load %arg1[%c1_8, %c0_9, %c0_10] : memref<2x8x256xf32, #tpu.memory_space<vmem>>, vector<1x8x256xf32>
    %16 = vector.shape_cast %15 : vector<1x8x256xf32> to vector<8x256xf32>
    %c17_i32_11 = arith.constant 17 : i32
    %17 = tpu.dynamic_rotate %16 by %c17_i32_11 dim 1 : vector<8x256xf32>, i32 -> vector<8x256xf32>
    %18 = vector.broadcast %8 : vector<1x256xf32> to vector<8x256xf32>
    %19 = arith.mulf %17, %18 : vector<8x256xf32>
    %c0_12 = arith.constant 0 : index
    %c256 = arith.constant 256 : index
    %20 = vector.load %arg6[%c0_12, %c256] : memref<72x512xf32, #tpu.memory_space<vmem>>, vector<8x256xf32>
    tpu.vector_store %arg6[%c0_12, %c256], %19 {strides = array<i32>} : memref<72x512xf32, #tpu.memory_space<vmem>>, vector<8x256xf32>,
    %c1_i32_13 = arith.constant 1 : i32
    %21 = vector.broadcast %c1_i32_13 : i32 to vector<1x256xi32>
    %22 = arith.cmpi sge, %0, %21 : vector<1x256xi32>
    %23 = arith.extui %22 : vector<1x256xi1> to vector<1x256xi32>
    %24 = arith.sitofp %23 : vector<1x256xi32> to vector<1x256xf32>
    %c0_14 = arith.constant 0 : index
    %c0_15 = arith.constant 0 : index
    %c0_16 = arith.constant 0 : index
    %25 = vector.load %arg1[%c0_14, %c0_15, %c0_16] : memref<2x8x256xf32, #tpu.memory_space<vmem>>, vector<1x8x256xf32>
    %26 = vector.shape_cast %25 : vector<1x8x256xf32> to vector<8x256xf32>
    %c16_i32 = arith.constant 16 : i32
    %27 = tpu.dynamic_rotate %26 by %c16_i32 dim 1 : vector<8x256xf32>, i32 -> vector<8x256xf32>
    %28 = vector.broadcast %24 : vector<1x256xf32> to vector<8x256xf32>
    %29 = arith.mulf %27, %28 : vector<8x256xf32>
    %c8 = arith.constant 8 : index
    %c0_17 = arith.constant 0 : index
    %30 = vector.load %arg6[%c8, %c0_17] : memref<72x512xf32, #tpu.memory_space<vmem>>, vector<8x256xf32>
    tpu.vector_store %arg6[%c8, %c0_17], %29 {strides = array<i32>} : memref<72x512xf32, #tpu.memory_space<vmem>>, vector<8x256xf32>,
    %c1_18 = arith.constant 1 : index
    %c0_19 = arith.constant 0 : index
    %c0_20 = arith.constant 0 : index
    %31 = vector.load %arg1[%c1_18, %c0_19, %c0_20] : memref<2x8x256xf32, #tpu.memory_space<vmem>>, vector<1x8x256xf32>
    %32 = vector.shape_cast %31 : vector<1x8x256xf32> to vector<8x256xf32>
    %c16_i32_21 = arith.constant 16 : i32
    %33 = tpu.dynamic_rotate %32 by %c16_i32_21 dim 1 : vector<8x256xf32>, i32 -> vector<8x256xf32>
    %34 = vector.broadcast %24 : vector<1x256xf32> to vector<8x256xf32>
    %35 = arith.mulf %33, %34 : vector<8x256xf32>
    %c8_22 = arith.constant 8 : index
    %c256_23 = arith.constant 256 : index
    %36 = vector.load %arg6[%c8_22, %c256_23] : memref<72x512xf32, #tpu.memory_space<vmem>>, vector<8x256xf32>
    tpu.vector_store %arg6[%c8_22, %c256_23], %35 {strides = array<i32>} : memref<72x512xf32, #tpu.memory_space<vmem>>, vector<8x256xf32>,
    %c1_i32_24 = arith.constant 1 : i32
    %37 = vector.broadcast %c1_i32_24 : i32 to vector<1x256xi32>
    %38 = arith.cmpi sge, %0, %37 : vector<1x256xi32>
    %c15_i32 = arith.constant 15 : i32
    %39 = vector.broadcast %c15_i32 : i32 to vector<1x256xi32>
    %40 = arith.cmpi slt, %1, %39 : vector<1x256xi32>
    %41 = arith.andi %38, %40 : vector<1x256xi1>
    %42 = arith.extui %41 : vector<1x256xi1> to vector<1x256xi32>
    %43 = arith.sitofp %42 : vector<1x256xi32> to vector<1x256xf32>
    %c0_25 = arith.constant 0 : index
    %c0_26 = arith.constant 0 : index
    %c0_27 = arith.constant 0 : index
    %44 = vector.load %arg1[%c0_25, %c0_26, %c0_27] : memref<2x8x256xf32, #tpu.memory_space<vmem>>, vector<1x8x256xf32>
    %45 = vector.shape_cast %44 : vector<1x8x256xf32> to vector<8x256xf32>
    %c15_i32_28 = arith.constant 15 : i32
    %46 = tpu.dynamic_rotate %45 by %c15_i32_28 dim 1 : vector<8x256xf32>, i32 -> vector<8x256xf32>
    %47 = vector.broadcast %43 : vector<1x256xf32> to vector<8x256xf32>
    %48 = arith.mulf %46, %47 : vector<8x256xf32>
    %c16 = arith.constant 16 : index
    %c0_29 = arith.constant 0 : index
    %49 = vector.load %arg6[%c16, %c0_29] : memref<72x512xf32, #tpu.memory_space<vmem>>, vector<8x256xf32>
    tpu.vector_store %arg6[%c16, %c0_29], %48 {strides = array<i32>} : memref<72x512xf32, #tpu.memory_space<vmem>>, vector<8x256xf32>,
    %c1_30 = arith.constant 1 : index
    %c0_31 = arith.constant 0 : index
    %c0_32 = arith.constant 0 : index
    %50 = vector.load %arg1[%c1_30, %c0_31, %c0_32] : memref<2x8x256xf32, #tpu.memory_space<vmem>>, vector<1x8x256xf32>
    %51 = vector.shape_cast %50 : vector<1x8x256xf32> to vector<8x256xf32>
    %c15_i32_33 = arith.constant 15 : i32
    %52 = tpu.dynamic_rotate %51 by %c15_i32_33 dim 1 : vector<8x256xf32>, i32 -> vector<8x256xf32>
    %53 = vector.broadcast %43 : vector<1x256xf32> to vector<8x256xf32>
    %54 = arith.mulf %52, %53 : vector<8x256xf32>
    %c16_34 = arith.constant 16 : index
    %c256_35 = arith.constant 256 : index
    %55 = vector.load %arg6[%c16_34, %c256_35] : memref<72x512xf32, #tpu.memory_space<vmem>>, vector<8x256xf32>
    tpu.vector_store %arg6[%c16_34, %c256_35], %54 {strides = array<i32>} : memref<72x512xf32, #tpu.memory_space<vmem>>, vector<8x256xf32>,
    %c1_i32_36 = arith.constant 1 : i32
    %56 = vector.broadcast %c1_i32_36 : i32 to vector<1x256xi32>
    %57 = arith.cmpi sge, %1, %56 : vector<1x256xi32>
    %58 = arith.extui %57 : vector<1x256xi1> to vector<1x256xi32>
    %59 = arith.sitofp %58 : vector<1x256xi32> to vector<1x256xf32>
    %c0_37 = arith.constant 0 : index
    %c0_38 = arith.constant 0 : index
    %c0_39 = arith.constant 0 : index
    %60 = vector.load %arg1[%c0_37, %c0_38, %c0_39] : memref<2x8x256xf32, #tpu.memory_space<vmem>>, vector<1x8x256xf32>
    %61 = vector.shape_cast %60 : vector<1x8x256xf32> to vector<8x256xf32>
    %c1_i32_40 = arith.constant 1 : i32
    %62 = tpu.dynamic_rotate %61 by %c1_i32_40 dim 1 : vector<8x256xf32>, i32 -> vector<8x256xf32>
    %63 = vector.broadcast %59 : vector<1x256xf32> to vector<8x256xf32>
    %64 = arith.mulf %62, %63 : vector<8x256xf32>
    %c24 = arith.constant 24 : index
    %c0_41 = arith.constant 0 : index
    %65 = vector.load %arg6[%c24, %c0_41] : memref<72x512xf32, #tpu.memory_space<vmem>>, vector<8x256xf32>
    tpu.vector_store %arg6[%c24, %c0_41], %64 {strides = array<i32>} : memref<72x512xf32, #tpu.memory_space<vmem>>, vector<8x256xf32>,
    %c1_42 = arith.constant 1 : index
    %c0_43 = arith.constant 0 : index
    %c0_44 = arith.constant 0 : index
    %66 = vector.load %arg1[%c1_42, %c0_43, %c0_44] : memref<2x8x256xf32, #tpu.memory_space<vmem>>, vector<1x8x256xf32>
    %67 = vector.shape_cast %66 : vector<1x8x256xf32> to vector<8x256xf32>
    %c1_i32_45 = arith.constant 1 : i32
    %68 = tpu.dynamic_rotate %67 by %c1_i32_45 dim 1 : vector<8x256xf32>, i32 -> vector<8x256xf32>
    %69 = vector.broadcast %59 : vector<1x256xf32> to vector<8x256xf32>
    %70 = arith.mulf %68, %69 : vector<8x256xf32>
    %c24_46 = arith.constant 24 : index
    %c256_47 = arith.constant 256 : index
    %71 = vector.load %arg6[%c24_46, %c256_47] : memref<72x512xf32, #tpu.memory_space<vmem>>, vector<8x256xf32>
    tpu.vector_store %arg6[%c24_46, %c256_47], %70 {strides = array<i32>} : memref<72x512xf32, #tpu.memory_space<vmem>>, vector<8x256xf32>,
    %c0_48 = arith.constant 0 : index
    %c0_49 = arith.constant 0 : index
    %c0_50 = arith.constant 0 : index
    %72 = vector.load %arg1[%c0_48, %c0_49, %c0_50] : memref<2x8x256xf32, #tpu.memory_space<vmem>>, vector<1x8x256xf32>
    %73 = vector.shape_cast %72 : vector<1x8x256xf32> to vector<8x256xf32>
    %c32 = arith.constant 32 : index
    %c0_51 = arith.constant 0 : index
    %74 = vector.load %arg6[%c32, %c0_51] : memref<72x512xf32, #tpu.memory_space<vmem>>, vector<8x256xf32>
    tpu.vector_store %arg6[%c32, %c0_51], %73 {strides = array<i32>} : memref<72x512xf32, #tpu.memory_space<vmem>>, vector<8x256xf32>,
    %c1_52 = arith.constant 1 : index
    %c0_53 = arith.constant 0 : index
    %c0_54 = arith.constant 0 : index
    %75 = vector.load %arg1[%c1_52, %c0_53, %c0_54] : memref<2x8x256xf32, #tpu.memory_space<vmem>>, vector<1x8x256xf32>
    %76 = vector.shape_cast %75 : vector<1x8x256xf32> to vector<8x256xf32>
    %c32_55 = arith.constant 32 : index
    %c256_56 = arith.constant 256 : index
    %77 = vector.load %arg6[%c32_55, %c256_56] : memref<72x512xf32, #tpu.memory_space<vmem>>, vector<8x256xf32>
    tpu.vector_store %arg6[%c32_55, %c256_56], %76 {strides = array<i32>} : memref<72x512xf32, #tpu.memory_space<vmem>>, vector<8x256xf32>,
    %c15_i32_57 = arith.constant 15 : i32
    %78 = vector.broadcast %c15_i32_57 : i32 to vector<1x256xi32>
    %79 = arith.cmpi slt, %1, %78 : vector<1x256xi32>
    %80 = arith.extui %79 : vector<1x256xi1> to vector<1x256xi32>
    %81 = arith.sitofp %80 : vector<1x256xi32> to vector<1x256xf32>
    %c0_58 = arith.constant 0 : index
    %c0_59 = arith.constant 0 : index
    %c0_60 = arith.constant 0 : index
    %82 = vector.load %arg1[%c0_58, %c0_59, %c0_60] : memref<2x8x256xf32, #tpu.memory_space<vmem>>, vector<1x8x256xf32>
    %83 = vector.shape_cast %82 : vector<1x8x256xf32> to vector<8x256xf32>
    %c255_i32 = arith.constant 255 : i32
    %84 = tpu.dynamic_rotate %83 by %c255_i32 dim 1 : vector<8x256xf32>, i32 -> vector<8x256xf32>
    %85 = vector.broadcast %81 : vector<1x256xf32> to vector<8x256xf32>
    %86 = arith.mulf %84, %85 : vector<8x256xf32>
    %c40 = arith.constant 40 : index
    %c0_61 = arith.constant 0 : index
    %87 = vector.load %arg6[%c40, %c0_61] : memref<72x512xf32, #tpu.memory_space<vmem>>, vector<8x256xf32>
    tpu.vector_store %arg6[%c40, %c0_61], %86 {strides = array<i32>} : memref<72x512xf32, #tpu.memory_space<vmem>>, vector<8x256xf32>,
    %c1_62 = arith.constant 1 : index
    %c0_63 = arith.constant 0 : index
    %c0_64 = arith.constant 0 : index
    %88 = vector.load %arg1[%c1_62, %c0_63, %c0_64] : memref<2x8x256xf32, #tpu.memory_space<vmem>>, vector<1x8x256xf32>
    %89 = vector.shape_cast %88 : vector<1x8x256xf32> to vector<8x256xf32>
    %c255_i32_65 = arith.constant 255 : i32
    %90 = tpu.dynamic_rotate %89 by %c255_i32_65 dim 1 : vector<8x256xf32>, i32 -> vector<8x256xf32>
    %91 = vector.broadcast %81 : vector<1x256xf32> to vector<8x256xf32>
    %92 = arith.mulf %90, %91 : vector<8x256xf32>
    %c40_66 = arith.constant 40 : index
    %c256_67 = arith.constant 256 : index
    %93 = vector.load %arg6[%c40_66, %c256_67] : memref<72x512xf32, #tpu.memory_space<vmem>>, vector<8x256xf32>
    tpu.vector_store %arg6[%c40_66, %c256_67], %92 {strides = array<i32>} : memref<72x512xf32, #tpu.memory_space<vmem>>, vector<8x256xf32>,
    %c15_i32_68 = arith.constant 15 : i32
    %94 = vector.broadcast %c15_i32_68 : i32 to vector<1x256xi32>
    %95 = arith.cmpi slt, %0, %94 : vector<1x256xi32>
    %c1_i32_69 = arith.constant 1 : i32
    %96 = vector.broadcast %c1_i32_69 : i32 to vector<1x256xi32>
    %97 = arith.cmpi sge, %1, %96 : vector<1x256xi32>
    %98 = arith.andi %95, %97 : vector<1x256xi1>
    %99 = arith.extui %98 : vector<1x256xi1> to vector<1x256xi32>
    %100 = arith.sitofp %99 : vector<1x256xi32> to vector<1x256xf32>
    %c0_70 = arith.constant 0 : index
    %c0_71 = arith.constant 0 : index
    %c0_72 = arith.constant 0 : index
    %101 = vector.load %arg1[%c0_70, %c0_71, %c0_72] : memref<2x8x256xf32, #tpu.memory_space<vmem>>, vector<1x8x256xf32>
    %102 = vector.shape_cast %101 : vector<1x8x256xf32> to vector<8x256xf32>
    %c241_i32 = arith.constant 241 : i32
    %103 = tpu.dynamic_rotate %102 by %c241_i32 dim 1 : vector<8x256xf32>, i32 -> vector<8x256xf32>
    %104 = vector.broadcast %100 : vector<1x256xf32> to vector<8x256xf32>
    %105 = arith.mulf %103, %104 : vector<8x256xf32>
    %c48 = arith.constant 48 : index
    %c0_73 = arith.constant 0 : index
    %106 = vector.load %arg6[%c48, %c0_73] : memref<72x512xf32, #tpu.memory_space<vmem>>, vector<8x256xf32>
    tpu.vector_store %arg6[%c48, %c0_73], %105 {strides = array<i32>} : memref<72x512xf32, #tpu.memory_space<vmem>>, vector<8x256xf32>,
    %c1_74 = arith.constant 1 : index
    %c0_75 = arith.constant 0 : index
    %c0_76 = arith.constant 0 : index
    %107 = vector.load %arg1[%c1_74, %c0_75, %c0_76] : memref<2x8x256xf32, #tpu.memory_space<vmem>>, vector<1x8x256xf32>
    %108 = vector.shape_cast %107 : vector<1x8x256xf32> to vector<8x256xf32>
    %c241_i32_77 = arith.constant 241 : i32
    %109 = tpu.dynamic_rotate %108 by %c241_i32_77 dim 1 : vector<8x256xf32>, i32 -> vector<8x256xf32>
    %110 = vector.broadcast %100 : vector<1x256xf32> to vector<8x256xf32>
    %111 = arith.mulf %109, %110 : vector<8x256xf32>
    %c48_78 = arith.constant 48 : index
    %c256_79 = arith.constant 256 : index
    %112 = vector.load %arg6[%c48_78, %c256_79] : memref<72x512xf32, #tpu.memory_space<vmem>>, vector<8x256xf32>
    tpu.vector_store %arg6[%c48_78, %c256_79], %111 {strides = array<i32>} : memref<72x512xf32, #tpu.memory_space<vmem>>, vector<8x256xf32>,
    %c15_i32_80 = arith.constant 15 : i32
    %113 = vector.broadcast %c15_i32_80 : i32 to vector<1x256xi32>
    %114 = arith.cmpi slt, %0, %113 : vector<1x256xi32>
    %115 = arith.extui %114 : vector<1x256xi1> to vector<1x256xi32>
    %116 = arith.sitofp %115 : vector<1x256xi32> to vector<1x256xf32>
    %c0_81 = arith.constant 0 : index
    %c0_82 = arith.constant 0 : index
    %c0_83 = arith.constant 0 : index
    %117 = vector.load %arg1[%c0_81, %c0_82, %c0_83] : memref<2x8x256xf32, #tpu.memory_space<vmem>>, vector<1x8x256xf32>
    %118 = vector.shape_cast %117 : vector<1x8x256xf32> to vector<8x256xf32>
    %c240_i32 = arith.constant 240 : i32
    %119 = tpu.dynamic_rotate %118 by %c240_i32 dim 1 : vector<8x256xf32>, i32 -> vector<8x256xf32>
    %120 = vector.broadcast %116 : vector<1x256xf32> to vector<8x256xf32>
    %121 = arith.mulf %119, %120 : vector<8x256xf32>
    %c56 = arith.constant 56 : index
    %c0_84 = arith.constant 0 : index
    %122 = vector.load %arg6[%c56, %c0_84] : memref<72x512xf32, #tpu.memory_space<vmem>>, vector<8x256xf32>
    tpu.vector_store %arg6[%c56, %c0_84], %121 {strides = array<i32>} : memref<72x512xf32, #tpu.memory_space<vmem>>, vector<8x256xf32>,
    %c1_85 = arith.constant 1 : index
    %c0_86 = arith.constant 0 : index
    %c0_87 = arith.constant 0 : index
    %123 = vector.load %arg1[%c1_85, %c0_86, %c0_87] : memref<2x8x256xf32, #tpu.memory_space<vmem>>, vector<1x8x256xf32>
    %124 = vector.shape_cast %123 : vector<1x8x256xf32> to vector<8x256xf32>
    %c240_i32_88 = arith.constant 240 : i32
    %125 = tpu.dynamic_rotate %124 by %c240_i32_88 dim 1 : vector<8x256xf32>, i32 -> vector<8x256xf32>
    %126 = vector.broadcast %116 : vector<1x256xf32> to vector<8x256xf32>
    %127 = arith.mulf %125, %126 : vector<8x256xf32>
    %c56_89 = arith.constant 56 : index
    %c256_90 = arith.constant 256 : index
    %128 = vector.load %arg6[%c56_89, %c256_90] : memref<72x512xf32, #tpu.memory_space<vmem>>, vector<8x256xf32>
    tpu.vector_store %arg6[%c56_89, %c256_90], %127 {strides = array<i32>} : memref<72x512xf32, #tpu.memory_space<vmem>>, vector<8x256xf32>,
    %c15_i32_91 = arith.constant 15 : i32
    %129 = vector.broadcast %c15_i32_91 : i32 to vector<1x256xi32>
    %130 = arith.cmpi slt, %0, %129 : vector<1x256xi32>
    %c15_i32_92 = arith.constant 15 : i32
    %131 = vector.broadcast %c15_i32_92 : i32 to vector<1x256xi32>
    %132 = arith.cmpi slt, %1, %131 : vector<1x256xi32>
    %133 = arith.andi %130, %132 : vector<1x256xi1>
    %134 = arith.extui %133 : vector<1x256xi1> to vector<1x256xi32>
    %135 = arith.sitofp %134 : vector<1x256xi32> to vector<1x256xf32>
    %c0_93 = arith.constant 0 : index
    %c0_94 = arith.constant 0 : index
    %c0_95 = arith.constant 0 : index
    %136 = vector.load %arg1[%c0_93, %c0_94, %c0_95] : memref<2x8x256xf32, #tpu.memory_space<vmem>>, vector<1x8x256xf32>
    %137 = vector.shape_cast %136 : vector<1x8x256xf32> to vector<8x256xf32>
    %c239_i32 = arith.constant 239 : i32
    %138 = tpu.dynamic_rotate %137 by %c239_i32 dim 1 : vector<8x256xf32>, i32 -> vector<8x256xf32>
    %139 = vector.broadcast %135 : vector<1x256xf32> to vector<8x256xf32>
    %140 = arith.mulf %138, %139 : vector<8x256xf32>
    %c64 = arith.constant 64 : index
    %c0_96 = arith.constant 0 : index
    %141 = vector.load %arg6[%c64, %c0_96] : memref<72x512xf32, #tpu.memory_space<vmem>>, vector<8x256xf32>
    tpu.vector_store %arg6[%c64, %c0_96], %140 {strides = array<i32>} : memref<72x512xf32, #tpu.memory_space<vmem>>, vector<8x256xf32>,
    %c1_97 = arith.constant 1 : index
    %c0_98 = arith.constant 0 : index
    %c0_99 = arith.constant 0 : index
    %142 = vector.load %arg1[%c1_97, %c0_98, %c0_99] : memref<2x8x256xf32, #tpu.memory_space<vmem>>, vector<1x8x256xf32>
    %143 = vector.shape_cast %142 : vector<1x8x256xf32> to vector<8x256xf32>
    %c239_i32_100 = arith.constant 239 : i32
    %144 = tpu.dynamic_rotate %143 by %c239_i32_100 dim 1 : vector<8x256xf32>, i32 -> vector<8x256xf32>
    %145 = vector.broadcast %135 : vector<1x256xf32> to vector<8x256xf32>
    %146 = arith.mulf %144, %145 : vector<8x256xf32>
    %c64_101 = arith.constant 64 : index
    %c256_102 = arith.constant 256 : index
    %147 = vector.load %arg6[%c64_101, %c256_102] : memref<72x512xf32, #tpu.memory_space<vmem>>, vector<8x256xf32>
    tpu.vector_store %arg6[%c64_101, %c256_102], %146 {strides = array<i32>} : memref<72x512xf32, #tpu.memory_space<vmem>>, vector<8x256xf32>,
    %c0_103 = arith.constant 0 : index
    %c0_104 = arith.constant 0 : index
    %148 = vector.load %arg2[%c0_103, %c0_104] : memref<8x72xf32, #tpu.memory_space<vmem>>, vector<8x72xf32>
    %c0_105 = arith.constant 0 : index
    %c0_106 = arith.constant 0 : index
    %149 = vector.load %arg6[%c0_105, %c0_106] : memref<72x512xf32, #tpu.memory_space<vmem>>, vector<72x512xf32>
    %cst = arith.constant dense<0.000000e+00> : vector<8x512xf32>
    %150 = tpu.matmul %148, %149, %cst {dimension_numbers = #tpu.dot_dimension_numbers<[1], [0], [0], [1], [0, 0, 1, 1], [], []>} : vector<8x72xf32>, vector<72x512xf32>, vector<8x512xf32> -> vector<8x512xf32>
    %c0_107 = arith.constant 0 : index
    %c0_108 = arith.constant 0 : index
    %151 = vector.load %arg3[%c0_107, %c0_108] : memref<8x1xf32, #tpu.memory_space<vmem>>, vector<8x1xf32>
    %152 = vector.broadcast %151 : vector<8x1xf32> to vector<8x512xf32>
    %153 = arith.addf %150, %152 : vector<8x512xf32>
    %cst_109 = arith.constant 0.000000e+00 : f32
    %cst_110 = arith.constant 6.000000e+00 : f32
    %154 = vector.broadcast %cst_109 : f32 to vector<8x512xf32>
    %155 = arith.maximumf %154, %153 : vector<8x512xf32>
    %156 = vector.broadcast %cst_110 : f32 to vector<8x512xf32>
    %157 = arith.minimumf %156, %155 : vector<8x512xf32>
    %158 = vector.extract_strided_slice %157 {offsets = [0, 0], sizes = [8, 256], strides = [1, 1]} : vector<8x512xf32> to vector<8x256xf32>
    %c0_111 = arith.constant 0 : index
    %c0_112 = arith.constant 0 : index
    %c0_113 = arith.constant 0 : index
    %159 = vector.load %arg5[%c0_111, %c0_112, %c0_113] : memref<2x8x256xf32, #tpu.memory_space<vmem>>, vector<1x8x256xf32>
    %160 = vector.shape_cast %159 : vector<1x8x256xf32> to vector<8x256xf32>
    %161 = vector.shape_cast %158 : vector<8x256xf32> to vector<1x8x256xf32>
    tpu.vector_store %arg5[%c0_111, %c0_112, %c0_113], %161 {strides = array<i32>} : memref<2x8x256xf32, #tpu.memory_space<vmem>>, vector<1x8x256xf32>,
    %162 = vector.extract_strided_slice %157 {offsets = [0, 256], sizes = [8, 256], strides = [1, 1]} : vector<8x512xf32> to vector<8x256xf32>
    %c1_114 = arith.constant 1 : index
    %c0_115 = arith.constant 0 : index
    %c0_116 = arith.constant 0 : index
    %163 = vector.load %arg5[%c1_114, %c0_115, %c0_116] : memref<2x8x256xf32, #tpu.memory_space<vmem>>, vector<1x8x256xf32>
    %164 = vector.shape_cast %163 : vector<1x8x256xf32> to vector<8x256xf32>
    %165 = vector.shape_cast %162 : vector<8x256xf32> to vector<1x8x256xf32>
    tpu.vector_store %arg5[%c1_114, %c0_115, %c0_116], %165 {strides = array<i32>} : memref<2x8x256xf32, #tpu.memory_space<vmem>>, vector<1x8x256xf32>,
    return
  }
  func.func @transform_0(%arg0: i32) -> (i32, i32, i32) {
    %c0_i32 = arith.constant 0 : i32
    %c0_i32_0 = arith.constant 0 : i32
    %c0_i32_1 = arith.constant 0 : i32
    return %arg0, %c0_i32, %c0_i32_0 : i32, i32, i32
  }
  func.func @transform_1(%arg0: i32) -> (i32, i32) {
    %c0_i32 = arith.constant 0 : i32
    %c0_i32_0 = arith.constant 0 : i32
    %c0_i32_1 = arith.constant 0 : i32
    return %c0_i32, %c0_i32_0 : i32, i32
  }
  func.func @transform_2(%arg0: i32) -> (i32, i32) {
    %c0_i32 = arith.constant 0 : i32
    %c0_i32_0 = arith.constant 0 : i32
    %c0_i32_1 = arith.constant 0 : i32
    return %c0_i32, %c0_i32_0 : i32, i32
  }
  func.func @transform_3(%arg0: i32) -> (i32, i32) {
    %c0_i32 = arith.constant 0 : i32
    %c0_i32_0 = arith.constant 0 : i32
    %c0_i32_1 = arith.constant 0 : i32
    return %c0_i32, %c0_i32_0 : i32, i32
  }
  func.func @transform_4(%arg0: i32) -> (i32, i32, i32) {
    %c0_i32 = arith.constant 0 : i32
    %c0_i32_0 = arith.constant 0 : i32
    %c0_i32_1 = arith.constant 0 : i32
    return %arg0, %c0_i32, %c0_i32_0 : i32, i32, i32
  }
}

</mosaic_0001>

<bundles_post_ra>
// kernel: tpu_custom_call.1
= control target key start
LH: loop header
LB: loop body
LE: loop exit
PB: predicated region body
PF: predicated region fallthrough
CT: control target
= control target key end

     0   :  { %9 = vsyncpa [#allocation4], 0  ;;  %s884_s0 = inlined_call_operand.hbm [shape: f32[2,8,256], index: 0, kind: input, shape index: {}]   ;;  %s885_s1 = inlined_call_operand.vmem [shape: f32[8,72], index: 1, kind: input, shape index: {}]   ;;  %s886_s2 = inlined_call_operand.vmem [shape: f32[8,1], index: 2, kind: input, shape index: {}]   ;;  %s887_s3 = inlined_call_operand.vmem [shape: s32[2,256], index: 3, kind: input, shape index: {}]   ;;  %s888_s4 = inlined_call_operand.hbm [shape: f32[2,8,256], index: 4, kind: output, shape index: {}]  }
   0x1   :  { %10 = vsyncpa [#allocation5], 0  ;;  %s646_s15 = smov [#allocation3]  }
   0x2   :  { %s16_s16 = sshll.u32 %s646_s15, 4  ;;  %s17_s16 = int_to_ptr.vmem [resolvable:$true] %s16_s16 }
   0x3   :  { %s610_s17 = scalar_lea.vmem %s17_s16, 512  ;;  %p615_p1 = scmp.lt.s32.totalorder %s17_s16, %s17_s16 }
   0x4   :  { %p611_p0 = scmp.ne.s32.totalorder %s17_s16, %s610_s17  ;;  %p616_p2 = scmp.lt.s32.totalorder %s610_s17, %s610_s17 }
   0x6   :  { %p617_p3 = por %p616_p2, %p615_p1 }
   0x8   :  { %p618_p4 = pnand %p617_p3, %p611_p0 }
   0xa   :  { %621 = shalt.err (!%p618_p4)
}
   0xb   :  { %s647_s18 = smov 256   ;;  %s648_s19 = smov 16  }
   0xc   :  { %22 = dma.hbm_to_vmem [thread:$0]  %s884_s0, 512, %s17_s16, [#allocation4], %s647_s18, %s647_s18, %s648_s19  }
   0xd   :  { %642 = dma.done.wait [#allocation4], 512  }
   0xe   :  { %643 = vsyncadd [#allocation4], 4294966784  ;;  %v649_v0 = vmov 0.0   ;;  %v692_v1 = vld [vmem:[#allocation3 + $0x10] sm:$0xff]  ;;  %v694_v2 = vld [vmem:[#allocation3] sm:$0xff]  ;;  %s650_s22 = smov 111   ;;  %v46_v7 = vlaneseq }
   0xf   :  { %469 = vmatprep.mubr.f32.mxu0 %v649_v0  ;;  %540 = vmatprep.mubr.f32.mxu1 %v649_v0  ;;  %v698_v3 = vld [vmem:[#allocation3 + $0x18] sm:$0xff]  ;;  %v700_v4 = vld [vmem:[#allocation3 + $0x8] sm:$0xff]  ;;  %s651_s0 = smov 112   ;;  %s652_s23 = smov 113   ;;  %v656_v5 = vmov 0   ;;  %v395_v6 = vld [vmem:[%s886_s2] sm:$0xff] }
  0x10   :  { %348 = vrot.lane.b32.xlu1 %v692_v1, %s650_s22  ;;  %324 = vrot.lane.b32.xlu0 %v694_v2, %s650_s22  ;;  %s653_s24 = smov 127   ;;  %s654_s25 = smov 1   ;;  %v742_v8 = vld [vmem:[%s887_s3] ss:$2 sm:$0x3]  ;;  %v53_v10 = vshrl.u32 %v46_v7, 7 }
  0x11   :  { %s655_s26 = smov 15   ;;  %601 = vset.pattern.permute.xlu0 %v656_v5  ;;  %s657_s27 = smov 17   ;;  %v747_v9 = vld [vmem:[%s887_s3 + $0x1] ss:$2 sm:$0x3]  ;;  %vm241_vm0 = vcmp.lt.s32.totalorder %v742_v8, 15 }
  0x12   :  { %vm117_vm1 = vcmp.lt.s32.totalorder %v747_v9, 15  ;;  %v755_v11 = vand.u32 127, %v46_v7  ;;  %v757_v12 = vsub.s32 0, %v53_v10  ;;  %v759_v13 = vsub.s32 1, %v53_v10 }
  0x13   :  { %vm319_vm2 = vmand %vm241_vm0, %vm117_vm1  ;;  %v584_v17 = vsel %vm241_vm0, 1.0, %v649_v0  ;;  %vm36_vm5 = vcmp.ge.s32.totalorder %v747_v9, 1  ;;  %v582_v53 = vsel %vm117_vm1, 1.0, %v649_v0  ;;  %vm35_vm10 = vcmp.ge.s32.totalorder %v742_v8, 1 }
  0x14   :  { %350 = vrot.lane.b32.xlu1 %v698_v3, %s650_s22  ;;  %326 = vrot.lane.b32.xlu0 %v700_v4, %s650_s22  ;;  %v585_v14 = vsel %vm319_vm2, 1.0, %v649_v0  ;;  %vm328_vm3 = vcmp.lt.s32.totalorder %v755_v11, 111  ;;  %vm289_vm4 = vcmp.lt.s32.totalorder %v755_v11, 112  ;;  %v296_v22 = vrot.slane %v584_v17, %v757_v12  ;;  %vm242_vm6 = vmand %vm241_vm0, %vm36_vm5 }
  0x15   :  { %v339_v18 = vrot.slane %v585_v14, %v759_v13  ;;  %v335_v19 = vrot.slane %v585_v14, %v757_v12  ;;  %v300_v23 = vrot.slane %v584_v17, %v759_v13  ;;  %v583_v38 = vsel %vm242_vm6, 1.0, %v649_v0  ;;  %vm118_vm11 = vmand %vm35_vm10, %vm117_vm1 }
  0x16   :  { %vm251_vm7 = vcmp.lt.s32.totalorder %v755_v11, 113  ;;  %v258_v45 = vrot.slane %v583_v38, %v757_v12  ;;  %v262_v46 = vrot.slane %v583_v38, %v759_v13  ;;  %vm211_vm8 = vcmp.lt.s32.totalorder %v755_v11, 127  ;;  %vm37_vm14 = vmand %vm35_vm10, %vm36_vm5 }
  0x17   :  { %v218_v60 = vrot.slane %v582_v53, %v757_v12  ;;  %v222_v61 = vrot.slane %v582_v53, %v759_v13  ;;  %v581_v14 = vsel %vm36_vm5, 1.0, %v649_v0  ;;  %vm165_vm9 = vcmp.lt.s32.totalorder %v755_v11, 1 }
  0x18   :  { %287 = vrot.lane.b32.xlu1 %v700_v4, %s651_s0  ;;  %285 = vrot.lane.b32.xlu0 %v694_v2, %s651_s0  ;;  %vm127_vm12 = vcmp.lt.s32.totalorder %v755_v11, 15  ;;  %vm87_vm13 = vcmp.lt.s32.totalorder %v755_v11, 16  ;;  %vm48_vm15 = vcmp.lt.s32.totalorder %v755_v11, 17  ;;  %vm401_vm0 = vcmask 588800  }
  0x1c   :  { %311 = vrot.lane.b32.xlu1 %v698_v3, %s651_s0  ;;  %309 = vrot.lane.b32.xlu0 %v692_v1, %s651_s0 }
  0x20   :  { %249 = vrot.lane.b32.xlu1 %v700_v4, %s652_s23  ;;  %247 = vrot.lane.b32.xlu0 %v694_v2, %s652_s23 }
  0x24   :  { %273 = vrot.lane.b32.xlu1 %v698_v3, %s652_s23  ;;  %271 = vrot.lane.b32.xlu0 %v692_v1, %s652_s23 }
  0x28   :  { %209 = vrot.lane.b32.xlu1 %v700_v4, %s653_s24  ;;  %207 = vrot.lane.b32.xlu0 %v694_v2, %s653_s24 }
  0x2c   :  { %233 = vrot.lane.b32.xlu1 %v698_v3, %s653_s24  ;;  %231 = vrot.lane.b32.xlu0 %v692_v1, %s653_s24 }
  0x30   :  { %163 = vrot.lane.b32.xlu1 %v700_v4, %s654_s25  ;;  %161 = vrot.lane.b32.xlu0 %v694_v2, %s654_s25 }
  0x34   :  { %187 = vrot.lane.b32.xlu1 %v698_v3, %s654_s25  ;;  %185 = vrot.lane.b32.xlu0 %v692_v1, %s654_s25 }
  0x38   :  { %125 = vrot.lane.b32.xlu1 %v700_v4, %s655_s26  ;;  %123 = vrot.lane.b32.xlu0 %v694_v2, %s655_s26 }
  0x3c   :  { %149 = vrot.lane.b32.xlu1 %v698_v3, %s655_s26  ;;  %147 = vrot.lane.b32.xlu0 %v692_v1, %s655_s26 }
  0x40   :  { %85 = vrot.lane.b32.xlu1 %v700_v4, %s648_s19  ;;  %83 = vrot.lane.b32.xlu0 %v694_v2, %s648_s19 }
  0x44   :  { %109 = vrot.lane.b32.xlu1 %v698_v3, %s648_s19  ;;  %107 = vrot.lane.b32.xlu0 %v692_v1, %s648_s19 }
  0x48   :  { %44 = vrot.lane.b32.xlu1 %v700_v4, %s657_s27  ;;  %42 = vrot.lane.b32.xlu0 %v694_v2, %s657_s27 }
  0x4c   :  { %71 = vrot.lane.b32.xlu1 %v698_v3, %s657_s27  ;;  %69 = vrot.lane.b32.xlu0 %v692_v1, %s657_s27 }
  0x50   :  { %398 = vperm.xlu0 %601, %v395_v6  }
  0x82   :  { %v349_v15 = vpop.permute.xlu1 %348  ;;  %v325_v16 = vpop.permute.xlu0 %324 }
  0x86   :  { %v351_v20 = vpop.permute.xlu1 %350  ;;  %v327_v21 = vpop.permute.xlu0 %326 }
  0x87   :  { %v352_v24 = vsel %vm328_vm3, %v349_v15, %v351_v20  ;;  %v329_v25 = vsel %vm328_vm3, %v325_v16, %v327_v21  ;;  %v330_v26 = vsel %vm328_vm3, %v327_v21, %v325_v16  ;;  %v353_v27 = vsel %vm328_vm3, %v351_v20, %v349_v15 }
  0x88   :  { %v343_v28 = vmul.f32 %v339_v18, %v330_v26  ;;  %v355_v29 = vmul.f32 %v353_v27, %v339_v18  ;;  %v342_v30 = vmul.f32 %v335_v19, %v329_v25  ;;  %v354_v31 = vmul.f32 %v352_v24, %v335_v19 }
  0x89   :  { %v172_v21 = vrot.slane %v581_v14, %v757_v12 }
  0x8a   :  { %v288_v32 = vpop.permute.xlu1 %287  ;;  %v286_v33 = vpop.permute.xlu0 %285  ;;  %419 = vmatprep.subr.mxu0 %v343_v28  ;;  %490 = vmatprep.subr.mxu1 %v355_v29 }
  0x8b   :  { %v290_v34 = vsel %vm289_vm4, %v286_v33, %v288_v32  ;;  %v291_v35 = vsel %vm289_vm4, %v288_v32, %v286_v33  ;;  %420 = vmatpush1.msra.mxu0 %v342_v30  ;;  %491 = vmatpush1.msra.mxu1 %v354_v31 }
  0x8c   :  { %v303_v36 = vmul.f32 %v296_v22, %v290_v34  ;;  %v304_v37 = vmul.f32 %v300_v23, %v291_v35 }
  0x8e   :  { %v312_v39 = vpop.permute.xlu1 %311  ;;  %v310_v40 = vpop.permute.xlu0 %309  ;;  %421 = vmatprep.subr.mxu0 %v304_v37 }
  0x8f   :  { %v313_v41 = vsel %vm289_vm4, %v310_v40, %v312_v39  ;;  %v314_v42 = vsel %vm289_vm4, %v312_v39, %v310_v40  ;;  %422 = vmatpush1.msra.mxu0 %v303_v36  ;;  %v579_v40 = vsel %vm35_vm10, 1.0, %v649_v0 }
  0x90   :  { %v315_v43 = vmul.f32 %v313_v41, %v296_v22  ;;  %v316_v44 = vmul.f32 %v314_v42, %v300_v23  ;;  %v176_v22 = vrot.slane %v581_v14, %v759_v13 }
  0x92   :  { %v250_v47 = vpop.permute.xlu1 %249  ;;  %v248_v48 = vpop.permute.xlu0 %247  ;;  %492 = vmatprep.subr.mxu1 %v316_v44 }
  0x93   :  { %v252_v49 = vsel %vm251_vm7, %v248_v48, %v250_v47  ;;  %v253_v50 = vsel %vm251_vm7, %v250_v47, %v248_v48  ;;  %493 = vmatpush1.msra.mxu1 %v315_v43  ;;  %v94_v47 = vrot.slane %v579_v40, %v757_v12  ;;  %v98_v48 = vrot.slane %v579_v40, %v759_v13 }
  0x94   :  { %v265_v51 = vmul.f32 %v258_v45, %v252_v49  ;;  %v266_v52 = vmul.f32 %v262_v46, %v253_v50 }
  0x96   :  { %v274_v54 = vpop.permute.xlu1 %273  ;;  %v272_v55 = vpop.permute.xlu0 %271  ;;  %423 = vmatprep.subr.mxu0 %v266_v52 }
  0x97   :  { %v275_v56 = vsel %vm251_vm7, %v272_v55, %v274_v54  ;;  %v276_v57 = vsel %vm251_vm7, %v274_v54, %v272_v55  ;;  %424 = vmatpush1.msra.mxu0 %v265_v51  ;;  %v578_v55 = vsel %vm37_vm14, 1.0, %v649_v0 }
  0x98   :  { %v277_v58 = vmul.f32 %v275_v56, %v258_v45  ;;  %v278_v59 = vmul.f32 %v276_v57, %v262_v46 }
  0x9a   :  { %v210_v62 = vpop.permute.xlu1 %209  ;;  %v208_v63 = vpop.permute.xlu0 %207  ;;  %494 = vmatprep.subr.mxu1 %v278_v59 }
  0x9b   :  { %v212_v5 = vsel %vm211_vm8, %v208_v63, %v210_v62  ;;  %v213_v6 = vsel %vm211_vm8, %v210_v62, %v208_v63  ;;  %495 = vmatpush1.msra.mxu1 %v277_v58 }
  0x9c   :  { %v225_v7 = vmul.f32 %v218_v60, %v212_v5  ;;  %v226_v10 = vmul.f32 %v222_v61, %v213_v6 }
  0x9e   :  { %v234_v15 = vpop.permute.xlu1 %233  ;;  %v232_v16 = vpop.permute.xlu0 %231  ;;  %425 = vmatprep.subr.mxu0 %v226_v10  ;;  %v358_v10 = vld [vmem:[%s885_s1] sm:$0xff]  ;;  %s658_s1 = smov [#allocation6]  }
  0x9f   :  { %v235_v17 = vsel %vm211_vm8, %v232_v16, %v234_v15  ;;  %v236_v18 = vsel %vm211_vm8, %v234_v15, %v232_v16  ;;  %426 = vmatpush1.msra.mxu0 %v225_v7  ;;  %s565_s8 = sshll.u32 %s658_s1, 4  ;;  %s566_s8 = int_to_ptr.vmem [resolvable:$true] %s565_s8 }
  0xa0   :  { %v237_v19 = vmul.f32 %v235_v17, %v218_v60  ;;  %v238_v20 = vmul.f32 %v236_v18, %v222_v61  ;;  %427 = vmatprep.subr.mxu0 %v700_v4  ;;  %v55_v60 = vrot.slane %v578_v55, %v757_v12  ;;  %v59_v61 = vrot.slane %v578_v55, %v759_v13  ;;  %s622_s9 = scalar_lea.vmem %s566_s8, 512  ;;  %p627_p6 = scmp.lt.s32.totalorder %s566_s8, %s566_s8 }
  0xa1   :  { %428 = vmatpush1.msra.mxu0 %v694_v2  ;;  %v580_v2 = vsel %vm118_vm11, 1.0, %v649_v0  ;;  %p623_p5 = scmp.ne.s32.totalorder %s566_s8, %s622_s9  ;;  %p628_p7 = scmp.lt.s32.totalorder %s622_s9, %s622_s9 }
  0xa2   :  { %v164_v23 = vpop.permute.xlu1 %163  ;;  %v162_v24 = vpop.permute.xlu0 %161  ;;  %496 = vmatprep.subr.mxu1 %v238_v20 }
  0xa3   :  { %v166_v25 = vsel %vm165_vm9, %v162_v24, %v164_v23  ;;  %v167_v26 = vsel %vm165_vm9, %v164_v23, %v162_v24  ;;  %497 = vmatpush1.msra.mxu1 %v237_v19  ;;  %p629_p8 = por %p628_p7, %p627_p6 }
  0xa4   :  { %v179_v27 = vmul.f32 %v172_v21, %v167_v26  ;;  %v180_v28 = vmul.f32 %v176_v22, %v166_v25  ;;  %498 = vmatprep.subr.mxu1 %v698_v3  ;;  %v134_v3 = vrot.slane %v580_v2, %v757_v12 }
  0xa5   :  { %499 = vmatpush1.msra.mxu1 %v692_v1  ;;  %v138_v1 = vrot.slane %v580_v2, %v759_v13  ;;  %p630_p9 = pnand %p629_p8, %p623_p5 }
  0xa6   :  { %v188_v4 = vpop.permute.xlu1 %187  ;;  %v186_v29 = vpop.permute.xlu0 %185  ;;  %429 = vmatprep.subr.mxu0 %v180_v28 }
  0xa7   :  { %v189_v30 = vsel %vm165_vm9, %v186_v29, %v188_v4  ;;  %v190_v31 = vsel %vm165_vm9, %v188_v4, %v186_v29  ;;  %430 = vmatpush1.msra.mxu0 %v179_v27 }
  0xa8   :  { %v191_v32 = vmul.f32 %v190_v31, %v172_v21  ;;  %v192_v33 = vmul.f32 %v189_v30, %v176_v22 }
  0xaa   :  { %v126_v34 = vpop.permute.xlu1 %125  ;;  %v124_v35 = vpop.permute.xlu0 %123  ;;  %500 = vmatprep.subr.mxu1 %v192_v33 }
  0xab   :  { %v128_v36 = vsel %vm127_vm12, %v124_v35, %v126_v34  ;;  %v129_v37 = vsel %vm127_vm12, %v126_v34, %v124_v35  ;;  %501 = vmatpush1.msra.mxu1 %v191_v32 }
  0xac   :  { %v141_v38 = vmul.f32 %v134_v3, %v129_v37  ;;  %v142_v39 = vmul.f32 %v138_v1, %v128_v36 }
  0xae   :  { %v150_v41 = vpop.permute.xlu1 %149  ;;  %v148_v42 = vpop.permute.xlu0 %147  ;;  %431 = vmatprep.subr.mxu0 %v142_v39 }
  0xaf   :  { %v151_v43 = vsel %vm127_vm12, %v148_v42, %v150_v41  ;;  %v152_v44 = vsel %vm127_vm12, %v150_v41, %v148_v42  ;;  %432 = vmatpush1.msra.mxu0 %v141_v38 }
  0xb0   :  { %v153_v45 = vmul.f32 %v152_v44, %v134_v3  ;;  %v154_v46 = vmul.f32 %v151_v43, %v138_v1 }
  0xb2   :  { %v86_v49 = vpop.permute.xlu1 %85  ;;  %v84_v50 = vpop.permute.xlu0 %83  ;;  %502 = vmatprep.subr.mxu1 %v154_v46 }
  0xb3   :  { %v88_v51 = vsel %vm87_vm13, %v84_v50, %v86_v49  ;;  %v89_v52 = vsel %vm87_vm13, %v86_v49, %v84_v50  ;;  %503 = vmatpush1.msra.mxu1 %v153_v45 }
  0xb4   :  { %v101_v53 = vmul.f32 %v94_v47, %v89_v52  ;;  %v102_v54 = vmul.f32 %v98_v48, %v88_v51 }
  0xb6   :  { %v110_v56 = vpop.permute.xlu1 %109  ;;  %v108_v57 = vpop.permute.xlu0 %107  ;;  %433 = vmatprep.subr.mxu0 %v102_v54 }
  0xb7   :  { %v111_v9 = vsel %vm87_vm13, %v108_v57, %v110_v56  ;;  %v112_v8 = vsel %vm87_vm13, %v110_v56, %v108_v57  ;;  %434 = vmatpush1.msra.mxu0 %v101_v53 }
  0xb8   :  { %v113_v58 = vmul.f32 %v112_v8, %v94_v47  ;;  %v114_v59 = vmul.f32 %v111_v9, %v98_v48 }
  0xba   :  { %v45_v62 = vpop.permute.xlu1 %44  ;;  %v43_v0 = vpop.permute.xlu0 %42  ;;  %504 = vmatprep.subr.mxu1 %v114_v59 }
  0xbb   :  { %v49_v63 = vsel %vm48_vm15, %v43_v0, %v45_v62  ;;  %v50_v5 = vsel %vm48_vm15, %v45_v62, %v43_v0  ;;  %505 = vmatpush1.msra.mxu1 %v113_v58 }
  0xbc   :  { %v62_v6 = vmul.f32 %v55_v60, %v50_v5  ;;  %v63_v7 = vmul.f32 %v59_v61, %v49_v63 }
  0xbe   :  { %v72_v12 = vpop.permute.xlu1 %71  ;;  %v70_v14 = vpop.permute.xlu0 %69  ;;  %435 = vmatprep.subr.mxu0 %v63_v7 }
  0xbf   :  { %v73_v13 = vsel %vm48_vm15, %v70_v14, %v72_v12  ;;  %v74_v15 = vsel %vm48_vm15, %v72_v12, %v70_v14  ;;  %436 = vmatpush1.msra.mxu0 %v62_v6 }
  0xc0   :  { %v75_v16 = vmul.f32 %v74_v15, %v55_v60  ;;  %v76_v17 = vmul.f32 %v73_v13, %v59_v61  ;;  %586 = vmatmul.mubr.msk.f32.vlgmr.msra.gmra.mxu0 %vm401_vm0, %v358_v10 }
  0xc2   :  { %506 = vmatprep.subr.mxu1 %v76_v17 }
  0xc3   :  { %507 = vmatpush1.msra.mxu1 %v75_v16 }
  0xc4   :  { %587 = vmatmul.mubr.msk.f32.vlgmr.msra.gmra.mxu1 %vm401_vm0, %v358_v10 }
  0xcb   :  { %v399_v18 = vpop.permute.xlu0 %398 }
 0x180   :  { %v471_v19 = vpop.f32.mrf.mxu0 }
 0x181   :  { %v472_v20 = vadd.f32 %v471_v19, %v399_v18 }
 0x182   :  { %v473_v21 = vpop.f32.mrf.mxu0 }
 0x183   :  { %v547_v22 = vmax.f32 %v472_v20, 0.0  ;;  %v474_v23 = vadd.f32 %v473_v21, %v399_v18 }
 0x184   :  { %v542_v24 = vpop.f32.mrf.mxu1 }
 0x185   :  { %v551_v25 = vmin.f32 %v547_v22, 6.0  ;;  %v548_v26 = vmax.f32 %v474_v23, 0.0  ;;  %v543_v27 = vadd.f32 %v542_v24, %v399_v18 }
 0x186   :  { %v544_v28 = vpop.f32.mrf.mxu1 }
 0x187   :  { %555 = vst [vmem:[#allocation6] sm:$0xff] %v551_v25  ;;  %v552_v11 = vmin.f32 %v548_v26, 6.0  ;;  %v549_v2 = vmax.f32 %v543_v27, 0.0  ;;  %v545_v4 = vadd.f32 %v544_v28, %v399_v18 }
 0x189   :  { %556 = vst [vmem:[#allocation6 + $0x8] sm:$0xff] %v552_v11  ;;  %v553_v29 = vmin.f32 %v549_v2, 6.0  ;;  %v550_v30 = vmax.f32 %v545_v4, 0.0 }
 0x18b   :  { %558 = vst [vmem:[#allocation6 + $0x10] sm:$0xff] %v553_v29  ;;  %v554_v31 = vmin.f32 %v550_v30, 6.0 }
 0x18d   :  { %559 = vst [vmem:[#allocation6 + $0x18] sm:$0xff] %v554_v31 }
 0x18e   :  { %633 = shalt.err (!%p630_p9)
}
 0x18f   :  { %571 = dma.vmem_to_hbm [thread:$0]  %s566_s8, 512, %s888_s4, [#allocation5], %s647_s18, %s647_s18, %s648_s19  }
 0x190   :  { %644 = dma.done.wait [#allocation5], 512  }
 0x191   :  { %645 = vsyncadd [#allocation5], 4294966784 }
 0x192   :  { %575 = vsyncpa [#allocation4], 1 }
 0x193   :  { %576 = vsyncpa [#allocation5], 1 }

</bundles_post_ra>
